<compile_context>
chip_gen: v7x
topology: tpu7x:2x2x1
jax: 0.10.0
libtpu: 0.0.40
codegen_flags: <defaults>
</compile_context>

<pallas_src>
import numpy as np
import jax
import jax.numpy as jnp
from jax.experimental import pallas as pl
from jax.experimental.pallas import tpu as pltpu

LEAKY_SLOPE = 0.01  # torch.nn.LeakyReLU() default


def _leaky_relu(x):
    return jnp.where(x > 0, x, LEAKY_SLOPE * x)


# activation_select(...) is not defined in the spec; support the usual choices.
_ACTIVATIONS = {
    'no': lambda x: x,
    'relu': jax.nn.relu,
    'leaky_relu': _leaky_relu,
    'tanh': jnp.tanh,
    'sigmoid': jax.nn.sigmoid,
}


def gcn_forward(x, a, weights, biases, *, residual=False, activation='no',
                batch_tile=None):
    """Batched GCN forward.

    x:       [B, N, in_dim]    node features (B graphs, N nodes each)
    a:       [B, N, N]         (normalized) adjacency / propagation matrix
    weights: list of [in_l, out_l] arrays  (== torch Linear.weight.T)
    biases:  list of [out_l] arrays
    """
    B, N, in_dim = x.shape
    assert a.shape == (B, N, N), "x.shape[0]/[1] must match a"
    n_layers = len(weights)
    in_dims = [int(w.shape[0]) for w in weights]
    out_dims = [int(w.shape[1]) for w in weights]
    assert in_dims[0] == in_dim
    out_max = max(out_dims)
    act_fn = _ACTIVATIONS[activation]

    # ---- pack parameters into two arrays (fewer, larger HBM->VMEM DMAs) ----
    w_all = jnp.concatenate(
        [jnp.pad(w, ((0, 0), (0, out_max - w.shape[1]))) for w in weights],
        axis=0)                                        # [sum(in_dims), out_max]
    b_all = jnp.stack(
        [jnp.pad(b, (0, out_max - b.shape[0])) for b in biases],
        axis=0)                                        # [n_layers, out_max]
    row_off = [0] + list(np.cumsum(in_dims).astype(int))

    final_dim = (in_dim + sum(out_dims)) if residual else out_dims[-1]

    if batch_tile is None:
        batch_tile = B
    assert B % batch_tile == 0
    grid = (B // batch_tile,)

    def kernel(x_ref, a_ref, w_ref, b_ref, out_ref):
        x_l = x_ref[...]                               # [BT, N, in_dim]
        a_l = a_ref[...]                               # [BT, N, N]
        xs = [x_l]
        for l in range(n_layers):
            d_in, d_out = in_dims[l], out_dims[l]
            w = w_ref[row_off[l]:row_off[l + 1], :d_out]     # static slices
            b = b_ref[l:l + 1, :d_out]                       # [1, d_out]
            # Shared-weight Linear over the whole batch tile: one big matmul.
            xw = jnp.dot(x_l.reshape(batch_tile * N, d_in), w,
                         preferred_element_type=jnp.float32) + b
            xw = xw.reshape(batch_tile, N, d_out)
            # Graph propagation: a @ (x W + b), batched over graphs.
            x2 = jnp.einsum('bij,bjh->bih', a_l, xw,
                            preferred_element_type=jnp.float32)
            x_l = _leaky_relu(x2) if l < n_layers - 1 else x2
            xs.append(x_l)
        out = jnp.concatenate(xs, axis=-1) if residual else xs[-1]
        out = act_fn(out)
        out_ref[...] = out.astype(out_ref.dtype)       # single contiguous store

    return pl.pallas_call(
        kernel,
        out_shape=jax.ShapeDtypeStruct((B, N, final_dim), jnp.float32),
        grid=grid,
        in_specs=[
            pl.BlockSpec((batch_tile, N, in_dim), lambda i: (i, 0, 0)),
            pl.BlockSpec((batch_tile, N, N), lambda i: (i, 0, 0)),
            pl.BlockSpec(w_all.shape, lambda i: (0, 0)),
            pl.BlockSpec(b_all.shape, lambda i: (0, 0)),
        ],
        out_specs=pl.BlockSpec((batch_tile, N, final_dim), lambda i: (i, 0, 0)),
        compiler_params=pltpu.CompilerParams(
            dimension_semantics=("parallel",)),
    )(x, a, w_all, b_all)


# ------------------------------ pure-JAX reference ---------------------------
def gcn_reference(x, a, weights, biases, *, residual=False, activation='no'):
    xs = [x]
    xl = x
    for l, (w, b) in enumerate(zip(weights, biases)):
        x2 = jnp.einsum('bij,bjh->bih', a, xl @ w + b)
        xl = _leaky_relu(x2) if l < len(weights) - 1 else x2
        xs.append(xl)
    out = jnp.concatenate(xs, axis=-1) if residual else xl
    return _ACTIVATIONS[activation](out)


if __name__ == "__main__":
    key = jax.random.PRNGKey(0)

    B, N = 8, 16                 # 8 graphs of 16 nodes per pallas_call
    IN_DIM = 16
    HIDDEN = [32, 32]
    OUT_DIM = 32
    dims_in = [IN_DIM] + HIDDEN
    dims_out = HIDDEN + [OUT_DIM]

    keys = jax.random.split(key, 2 + 2 * len(dims_in))
    x = jax.random.normal(keys[0], (B, N, IN_DIM), jnp.float32)

    # Symmetric adjacency with self loops, row-normalized (GCN-style propagation).
    adj = (jax.random.uniform(keys[1], (B, N, N)) < 0.3).astype(jnp.float32)
    adj = jnp.minimum(adj + jnp.transpose(adj, (0, 2, 1)) + jnp.eye(N)[None], 1.0)
    a = adj / jnp.sum(adj, axis=-1, keepdims=True)

    weights, biases = [], []
    scale = 0.1
    for li, (di, do) in enumerate(zip(dims_in, dims_out)):
        weights.append(scale * jax.random.normal(keys[2 + 2 * li], (di, do), jnp.float32))
        biases.append(scale * jax.random.normal(keys[3 + 2 * li], (do,), jnp.float32))

    for residual in (False, True):
        out = jax.block_until_ready(
            gcn_forward(x, a, weights, biases,
                        residual=residual, activation='no', batch_tile=4))
        ref = gcn_reference(x, a, weights, biases,
                            residual=residual, activation='no')
        assert out.shape == ref.shape
        err = float(jnp.max(jnp.abs(out - ref)))
        assert jnp.allclose(out, ref, atol=1e-5, rtol=1e-5), err

    print("KERNEL_OK")
</pallas_src>

<mosaic_0001>
module attributes {stable_mosaic.version = 11 : i64} {
  func.func @kernel(%arg0: i32, %arg1: memref<4x16x16xf32, #tpu.memory_space<vmem>>, %arg2: memref<4x16x16xf32, #tpu.memory_space<vmem>>, %arg3: memref<80x32xf32, #tpu.memory_space<vmem>>, %arg4: memref<3x32xf32, #tpu.memory_space<vmem>>, %arg5: memref<4x16x32xf32, #tpu.memory_space<vmem>>) attributes {dimension_semantics = [#tpu.dimension_semantics<parallel>], iteration_bounds = array<i64: 2>, scalar_prefetch = 0 : i64, scratch_operands = 0 : i64, tpu.core_type = #tpu.core_type<tc>, window_params = [{transform_indices = @transform_0, window_bounds = array<i64: 4, 16, 16>}, {transform_indices = @transform_1, window_bounds = array<i64: 4, 16, 16>}, {pipeline_mode = #tpu.pipeline_mode<synchronous>, transform_indices = @transform_2, window_bounds = array<i64: 80, 32>}, {pipeline_mode = #tpu.pipeline_mode<synchronous>, transform_indices = @transform_3, window_bounds = array<i64: 3, 32>}, {transform_indices = @transform_4, window_bounds = array<i64: 4, 16, 32>}]} {
    %c0 = arith.constant 0 : index
    %c0_0 = arith.constant 0 : index
    %c0_1 = arith.constant 0 : index
    %0 = vector.load %arg1[%c0, %c0_0, %c0_1] : memref<4x16x16xf32, #tpu.memory_space<vmem>>, vector<4x16x16xf32>
    %c0_2 = arith.constant 0 : index
    %c0_3 = arith.constant 0 : index
    %c0_4 = arith.constant 0 : index
    %1 = vector.load %arg2[%c0_2, %c0_3, %c0_4] : memref<4x16x16xf32, #tpu.memory_space<vmem>>, vector<4x16x16xf32>
    %c0_5 = arith.constant 0 : index
    %c0_6 = arith.constant 0 : index
    %2 = vector.load %arg3[%c0_5, %c0_6] : memref<80x32xf32, #tpu.memory_space<vmem>>, vector<16x32xf32>
    %c0_7 = arith.constant 0 : index
    %c0_8 = arith.constant 0 : index
    %3 = vector.load %arg4[%c0_7, %c0_8] : memref<3x32xf32, #tpu.memory_space<vmem>>, vector<1x32xf32>
    %4 = vector.shape_cast %0 : vector<4x16x16xf32> to vector<64x16xf32>
    %cst = arith.constant dense<0.000000e+00> : vector<64x32xf32>
    %5 = tpu.matmul %4, %2, %cst {dimension_numbers = #tpu.dot_dimension_numbers<[1], [0], [0], [1], [0, 0, 1, 1], [], []>} : vector<64x16xf32>, vector<16x32xf32>, vector<64x32xf32> -> vector<64x32xf32>
    %6 = vector.broadcast %3 : vector<1x32xf32> to vector<64x32xf32>
    %7 = arith.addf %5, %6 : vector<64x32xf32>
    %8 = vector.shape_cast %7 : vector<64x32xf32> to vector<4x16x32xf32>
    "tpu.trace_start"() <{level = 10 : i32, message = "bij,bjh->bih"}> : () -> ()
    %cst_9 = arith.constant dense<0.000000e+00> : vector<4x16x32xf32>
    %9 = tpu.matmul %1, %8, %cst_9 {dimension_numbers = #tpu.dot_dimension_numbers<[2], [1], [1], [2], [0, 0, 0, 1, 1, 2], [0], [0]>} : vector<4x16x16xf32>, vector<4x16x32xf32>, vector<4x16x32xf32> -> vector<4x16x32xf32>
    %cst_10 = arith.constant 0.000000e+00 : f32
    "tpu.trace_stop"() : () -> ()
    %10 = vector.broadcast %cst_10 : f32 to vector<4x16x32xf32>
    %11 = arith.cmpf ogt, %9, %10 : vector<4x16x32xf32>
    %cst_11 = arith.constant 0.00999999977 : f32
    %12 = vector.broadcast %cst_11 : f32 to vector<4x16x32xf32>
    %13 = arith.mulf %12, %9 : vector<4x16x32xf32>
    %14 = arith.select %11, %9, %13 : vector<4x16x32xi1>, vector<4x16x32xf32>
    %c16 = arith.constant 16 : index
    %c0_12 = arith.constant 0 : index
    %15 = vector.load %arg3[%c16, %c0_12] : memref<80x32xf32, #tpu.memory_space<vmem>>, vector<32x32xf32>
    %c1 = arith.constant 1 : index
    %c0_13 = arith.constant 0 : index
    %16 = vector.load %arg4[%c1, %c0_13] : memref<3x32xf32, #tpu.memory_space<vmem>>, vector<1x32xf32>
    %17 = vector.shape_cast %14 : vector<4x16x32xf32> to vector<64x32xf32>
    %cst_14 = arith.constant dense<0.000000e+00> : vector<64x32xf32>
    %18 = tpu.matmul %17, %15, %cst_14 {dimension_numbers = #tpu.dot_dimension_numbers<[1], [0], [0], [1], [0, 0, 1, 1], [], []>} : vector<64x32xf32>, vector<32x32xf32>, vector<64x32xf32> -> vector<64x32xf32>
    %19 = vector.broadcast %16 : vector<1x32xf32> to vector<64x32xf32>
    %20 = arith.addf %18, %19 : vector<64x32xf32>
    %21 = vector.shape_cast %20 : vector<64x32xf32> to vector<4x16x32xf32>
    "tpu.trace_start"() <{level = 10 : i32, message = "bij,bjh->bih"}> : () -> ()
    %cst_15 = arith.constant dense<0.000000e+00> : vector<4x16x32xf32>
    %22 = tpu.matmul %1, %21, %cst_15 {dimension_numbers = #tpu.dot_dimension_numbers<[2], [1], [1], [2], [0, 0, 0, 1, 1, 2], [0], [0]>} : vector<4x16x16xf32>, vector<4x16x32xf32>, vector<4x16x32xf32> -> vector<4x16x32xf32>
    %cst_16 = arith.constant 0.000000e+00 : f32
    "tpu.trace_stop"() : () -> ()
    %23 = vector.broadcast %cst_16 : f32 to vector<4x16x32xf32>
    %24 = arith.cmpf ogt, %22, %23 : vector<4x16x32xf32>
    %cst_17 = arith.constant 0.00999999977 : f32
    %25 = vector.broadcast %cst_17 : f32 to vector<4x16x32xf32>
    %26 = arith.mulf %25, %22 : vector<4x16x32xf32>
    %27 = arith.select %24, %22, %26 : vector<4x16x32xi1>, vector<4x16x32xf32>
    %c48 = arith.constant 48 : index
    %c0_18 = arith.constant 0 : index
    %28 = vector.load %arg3[%c48, %c0_18] : memref<80x32xf32, #tpu.memory_space<vmem>>, vector<32x32xf32>
    %c2 = arith.constant 2 : index
    %c0_19 = arith.constant 0 : index
    %29 = vector.load %arg4[%c2, %c0_19] : memref<3x32xf32, #tpu.memory_space<vmem>>, vector<1x32xf32>
    %30 = vector.shape_cast %27 : vector<4x16x32xf32> to vector<64x32xf32>
    %cst_20 = arith.constant dense<0.000000e+00> : vector<64x32xf32>
    %31 = tpu.matmul %30, %28, %cst_20 {dimension_numbers = #tpu.dot_dimension_numbers<[1], [0], [0], [1], [0, 0, 1, 1], [], []>} : vector<64x32xf32>, vector<32x32xf32>, vector<64x32xf32> -> vector<64x32xf32>
    %32 = vector.broadcast %29 : vector<1x32xf32> to vector<64x32xf32>
    %33 = arith.addf %31, %32 : vector<64x32xf32>
    %34 = vector.shape_cast %33 : vector<64x32xf32> to vector<4x16x32xf32>
    "tpu.trace_start"() <{level = 10 : i32, message = "bij,bjh->bih"}> : () -> ()
    %cst_21 = arith.constant dense<0.000000e+00> : vector<4x16x32xf32>
    %35 = tpu.matmul %1, %34, %cst_21 {dimension_numbers = #tpu.dot_dimension_numbers<[2], [1], [1], [2], [0, 0, 0, 1, 1, 2], [0], [0]>} : vector<4x16x16xf32>, vector<4x16x32xf32>, vector<4x16x32xf32> -> vector<4x16x32xf32>
    "tpu.trace_stop"() : () -> ()
    %c0_22 = arith.constant 0 : index
    %c0_23 = arith.constant 0 : index
    %c0_24 = arith.constant 0 : index
    %36 = vector.load %arg5[%c0_22, %c0_23, %c0_24] : memref<4x16x32xf32, #tpu.memory_space<vmem>>, vector<4x16x32xf32>
    tpu.vector_store %arg5[%c0_22, %c0_23, %c0_24], %35 {strides = array<i32>} : memref<4x16x32xf32, #tpu.memory_space<vmem>>, vector<4x16x32xf32>,
    return
  }
  func.func @transform_0(%arg0: i32) -> (i32, i32, i32) {
    %c0_i32 = arith.constant 0 : i32
    %c0_i32_0 = arith.constant 0 : i32
    %c0_i32_1 = arith.constant 0 : i32
    return %arg0, %c0_i32, %c0_i32_0 : i32, i32, i32
  }
  func.func @transform_1(%arg0: i32) -> (i32, i32, i32) {
    %c0_i32 = arith.constant 0 : i32
    %c0_i32_0 = arith.constant 0 : i32
    %c0_i32_1 = arith.constant 0 : i32
    return %arg0, %c0_i32, %c0_i32_0 : i32, i32, i32
  }
  func.func @transform_2(%arg0: i32) -> (i32, i32) {
    %c0_i32 = arith.constant 0 : i32
    %c0_i32_0 = arith.constant 0 : i32
    %c0_i32_1 = arith.constant 0 : i32
    return %c0_i32, %c0_i32_0 : i32, i32
  }
  func.func @transform_3(%arg0: i32) -> (i32, i32) {
    %c0_i32 = arith.constant 0 : i32
    %c0_i32_0 = arith.constant 0 : i32
    %c0_i32_1 = arith.constant 0 : i32
    return %c0_i32, %c0_i32_0 : i32, i32
  }
  func.func @transform_4(%arg0: i32) -> (i32, i32, i32) {
    %c0_i32 = arith.constant 0 : i32
    %c0_i32_0 = arith.constant 0 : i32
    %c0_i32_1 = arith.constant 0 : i32
    return %arg0, %c0_i32, %c0_i32_0 : i32, i32, i32
  }
}

</mosaic_0001>

<bundles_post_ra>
// kernel: tpu_custom_call.1
= control target key start
LH: loop header
LB: loop body
LE: loop exit
PB: predicated region body
PF: predicated region fallthrough
CT: control target
= control target key end

     0   :  { %9 = vsyncpa [#allocation3], 0  ;;  %s2742_s0 = inlined_call_operand.hbm [shape: f32[8,16,16], index: 0, kind: input, shape index: {}]   ;;  %s2743_s1 = inlined_call_operand.hbm [shape: f32[8,16,16], index: 1, kind: input, shape index: {}]   ;;  %s2744_s2 = inlined_call_operand.vmem [shape: f32[80,32], index: 2, kind: input, shape index: {}]   ;;  %s2745_s3 = inlined_call_operand.vmem [shape: f32[3,32], index: 3, kind: input, shape index: {}]   ;;  %s2746_s4 = inlined_call_operand.hbm [shape: f32[8,16,32], index: 4, kind: output, shape index: {}]  }
   0x1   :  { %11 = vsyncpa [#allocation3 + $0x1], 0 }
   0x2   :  { %12 = vsyncpa [#allocation6], 0 }
   0x3   :  { %14 = vsyncpa [#allocation6 + $0x1], 0 }
   0x4   :  { %15 = vsyncpa [#allocation4], 0 }
   0x5   :  { %17 = vsyncpa [#allocation4 + $0x1], 0  ;;  %s2369_s15 = smov 0   ;;  %s2371_s16 = smov 0  }
   0x6   :  { %s2373_s17 = smov 0   ;;  %s2375_s18 = smov 0  }
   0x7 LB: > { %s2390_s19 = sadd.s32 4294967295, %s2335_s18   ;;  %s1782_s20 = sadd.s32 4294967294, %s2335_s18   ;;  %s2335_s18 = sphi %s2375_s18, %s2762_s18   ;;  %s2331_s17 = sphi %s2373_s17, %s2761_s17   ;;  %s2327_s16 = sphi %s2371_s16, %s2760_s16   ;;  %s2323_s15 = sphi %s2369_s15, %s2759_s15  }
   0x8   : > { %s2394_s21 = sadd.s32 1, %s2335_s18   ;;  %s30_s22 = sadd.s32 1, %s2331_s17 }
   0x9   : > { %s27_s23 = ssub.s32 %s2335_s18, %s2394_s21  ;;  %p37_p0 = scmp.ne.s32.totalorder %s2331_s17, %s2327_s16 }
   0xa   : > { %p28_p1 = scmp.eq.s32.totalorder %s27_s23, 0  ;;  %p38_p2 = scmp.eq.s32.totalorder %s2335_s18, 0 }
   0xb   : > { %p43_p3 = scmp.ne.s32.totalorder %s2327_s16, %s2323_s15  ;;  %p44_p4 = scmp.eq.s32.totalorder %s2390_s19, 0 }
   0xc   : > { %s2406_s24 = scalar_select %p28_p1, %s2331_s17, %s30_s22  }
   0xd   : > { %p2408_p5 = por %p38_p2, %p37_p0  ;;  %p2412_p6 = por %p44_p4, %p43_p3 }
   0xe   : > { %p135_p7 = scmp.eq.s32.totalorder %s2390_s19, 1  ;;  %p141_p8 = scmp.eq.s32.totalorder %s1782_s20, 1 }
   0xf   : > { %s2750_s26 = scalar_select %p2412_p6, 1, 0 }
  0x10   : > { %p2167_p10 = scmp.lt.s32.totalorder %s2335_s18, 2  ;;  %p2419_p11 = por %p135_p7, %p37_p0 }
  0x11   : > { %p2423_p12 = por %p141_p8, %p43_p3  ;;  %s2428_s29 = sand.u32 1, %s2331_s17  }
  0x12   : > { %s2751_s27 = scalar_select %p2419_p11, 1, 0 }
  0x13   : > { %s2752_s28 = scalar_select %p2423_p12, 1, 0 }
  0x14   : > { %s1855_s30 = sshll.u32 %s2335_s18, 10  ;;  %s1785_s5 = sshll.u32 %s2428_s29, 6 }
  0x15   : > { %s2437_s8 = scalar_lea.hbm %s2742_s0, %s1855_s30  ;;  %s171_s9 = scalar_lea.vmem [#allocation2], %s1785_s5 }
  0x16   : > { %s179_s10 = sshll.u32 %s171_s9, 4  ;;  %p2443_p13 = pnand %p2167_p10, %p2408_p5  ;;  %s2447_s10 = int_to_ptr.vmem [resolvable:$true] %s179_s10 }
  0x17   : > { %s168_s12 = scalar_lea.sflag [#allocation3], %s2428_s29  ;;  %s2205_s13 = scalar_lea.hbm %s2437_s8, 1024 }
  0x18   : > { %p2206_p0 = scmp.ne.s32.totalorder %s2437_s8, %s2205_s13  ;;  %p2207_p1 = pneg %p2443_p13 }
  0x19   : > { %s2210_s22 = scalar_lea.hbm %s2742_s0, 2048  ;;  %p2211_p4 = scmp.lt.u32.totalorder %s2437_s8, %s2742_s0 }
  0x1a   : > { %p2208_p2 = pnand %p2207_p1, %p2206_p0  ;;  %p2212_p5 = scmp.lt.u32.totalorder %s2210_s22, %s2205_s13 }
  0x1b   : > { %p2214_p8 = scmp.lt.u32.totalorder %s2205_s13, %s2437_s8 }
  0x1c   : > { %p2209_p3 = pneg %p2208_p2  ;;  %p2213_p7 = por %p2212_p5, %p2211_p4 }
  0x1e   : > { %p2215_p10 = por %p2214_p8, %p2213_p7 }
  0x20   : > { %p2216_p9 = pnand %p2215_p10, %p2209_p3 }
  0x22   : > { %2219 = shalt.err (!%p2216_p9)
}
  0x23   : > { %s2220_s6 = scalar_lea.vmem %s2447_s10, 1024  ;;  %s2337_s7 = smov [#allocation2]  }
  0x24   : > { %p2221_p0 = scmp.ne.s32.totalorder %s2447_s10, %s2220_s6  ;;  %s2225_s9 = sshll.u32 %s2337_s7, 4  ;;  %s2226_s9 = int_to_ptr.vmem [resolvable:$false] %s2225_s9 }
  0x25   : > { %s2227_s14 = scalar_lea.vmem %s2226_s9, 2048  ;;  %p2228_p11 = scmp.lt.s32.totalorder %s2447_s10, %s2226_s9 }
  0x26   : > { %p2223_p2 = pnand %p2221_p0, %p2207_p1  ;;  %p2229_p4 = scmp.lt.s32.totalorder %s2227_s14, %s2220_s6 }
  0x28   : > { %p2224_p12 = pneg %p2223_p2  ;;  %p2230_p5 = por %p2229_p4, %p2228_p11 }
  0x2a   : > { %p2231_p7 = pnand %p2230_p5, %p2224_p12 }
  0x2c   : > { %2234 = shalt.err (!%p2231_p7)
}
  0x2d   : > { %s2338_s13 = smov 128   ;;  %s2339_s20 = smov 8  }
  0x2e   : > { %2159 = dma.hbm_to_vmem [thread:$0]  (!%p2443_p13), %s2437_s8, 1024, %s2447_s10, %s168_s12, %s2338_s13, %s2338_s13, %s2339_s20  }
  0x2f   : > { %p1793_p9 = scmp.ge.s32.totalorder %s2335_s18, 1  ;;  %p209_p11 = scmp.lt.s32.totalorder %s2335_s18, 3 }
  0x30   : > { %s2491_s6 = scalar_lea.hbm %s2743_s1, %s1855_s30  ;;  %s193_s7 = scalar_lea.vmem [#allocation5], %s1785_s5 }
  0x31   : > { %p2482_p12 = pnand %p1793_p9, %p209_p11  ;;  %s201_s9 = sshll.u32 %s193_s7, 4  ;;  %s2495_s9 = int_to_ptr.vmem [resolvable:$true] %s201_s9 }
  0x32   : > { %s190_s8 = scalar_lea.sflag [#allocation6], %s2428_s29  ;;  %s2235_s10 = scalar_lea.hbm %s2491_s6, 1024 }
  0x33   : > { %p2236_p3 = scmp.ne.s32.totalorder %s2491_s6, %s2235_s10  ;;  %s2240_s30 = scalar_lea.hbm %s2743_s1, 2048 }
  0x34   : > { %p2241_p0 = scmp.lt.u32.totalorder %s2491_s6, %s2743_s1  ;;  %p2242_p2 = scmp.lt.u32.totalorder %s2240_s30, %s2235_s10 }
  0x35   : > { %p2238_p8 = pnand %p2236_p3, %p2207_p1  ;;  %p2244_p5 = scmp.lt.u32.totalorder %s2235_s10, %s2491_s6 }
  0x36   : > { %p2243_p4 = por %p2242_p2, %p2241_p0 }
  0x37   : > { %p2239_p10 = pneg %p2238_p8 }
  0x38   : > { %p2245_p7 = por %p2244_p5, %p2243_p4 }
  0x3a   : > { %p2246_p9 = pnand %p2245_p7, %p2239_p10 }
  0x3c   : > { %2249 = shalt.err (!%p2246_p9)
}
  0x3d   : > { %s2250_s5 = scalar_lea.vmem %s2495_s9, 1024  ;;  %s2340_s7 = smov [#allocation5]  }
  0x3e   : > { %p2251_p11 = scmp.ne.s32.totalorder %s2495_s9, %s2250_s5  ;;  %s2255_s12 = sshll.u32 %s2340_s7, 4  ;;  %s2256_s12 = int_to_ptr.vmem [resolvable:$false] %s2255_s12 }
  0x3f   : > { %s2257_s14 = scalar_lea.vmem %s2256_s12, 2048  ;;  %p2258_p6 = scmp.lt.s32.totalorder %s2495_s9, %s2256_s12 }
  0x40   : > { %p2253_p3 = pnand %p2251_p11, %p2207_p1  ;;  %p2259_p0 = scmp.lt.s32.totalorder %s2257_s14, %s2250_s5 }
  0x42   : > { %p2254_p8 = pneg %p2253_p3  ;;  %p2260_p2 = por %p2259_p0, %p2258_p6 }
  0x44   : > { %p2261_p4 = pnand %p2260_p2, %p2254_p8 }
  0x46   : > { %2264 = shalt.err (!%p2261_p4)
}
  0x47   : > { %2162 = dma.hbm_to_vmem [thread:$0]  (!%p2443_p13), %s2491_s6, 1024, %s2495_s9, %s190_s8, %s2338_s13, %s2338_s13, %s2339_s20  }
  0x48   : > { %213 = sbr.rel (%p2482_p12) target bundleno = 1426 (0x592), region = 36  ;;  %s2529_s10 = sand.u32 (!%p2482_p12), 1, %s2327_s16  }
  0x49   : > { %s2532_s30 = sshll.u32 (!%p2482_p12), %s2529_s10, 6  ;;  %s216_s11 = scalar_lea.sflag (!%p2482_p12), [#allocation3], %s2529_s10 }
  0x4a   : > { %s219_s23 = scalar_lea.vmem (!%p2482_p12), [#allocation2], %s2532_s30  ;;  %p2755_p6 = scmp.ne.s32.totalorder (!%p2482_p12), %s2750_s26, 0 }
  0x4f   : > { %2310 = dma.done.wait (%p2755_p6), %s216_s11, 1024  }
  0x50   : > { %2312 = vsyncadd (%p2755_p6), %s216_s11, 4294966272  ;;  %s225_s29 = scalar_lea.sflag [#allocation6], %s2529_s10  ;;  %s2542_s13 = scalar_lea.vmem [#allocation5], %s2532_s30 }
  0x51   : > { %2314 = dma.done.wait (%p2755_p6), %s225_s29, 1024  }
  0x52   : > { %2316 = vsyncadd (%p2755_p6), %s225_s29, 4294966272  ;;  %vm284_vm0 = vcmask 130048   ;;  %v277_v0 = vld [vmem:[%s2744_s2] sm:$0xff]  ;;  %v278_v1 = vld [vmem:[%s2744_s2 + $0x8] sm:$0xff]  ;;  %vm771_vm3 = vcmask 261120   ;;  %s257_s11 = scalar_lea.vmem [#allocation7], %s2532_s30 }
  0x53   : > { %v261_v2 = vld [vmem:[%s219_s23] sm:$0xff]  ;;  %v2082_v3 = vpack.c.bf16 %v278_v1, %v277_v0  ;;  %v262_v4 = vld [vmem:[%s219_s23 + $0x8] sm:$0xff]  ;;  %v263_v5 = vld [vmem:[%s219_s23 + $0x10] sm:$0xff]  ;;  %s1859_s29 = sshll.u32 %s2390_s19, 10  ;;  %s1672_s19 = scalar_lea.sflag [#allocation4], %s2529_s10 }
  0x54   : > { %1946 = vmatprep.mubr.msk.f32.mxu0 %vm284_vm0, %v261_v2  ;;  %v264_v6 = vld [vmem:[%s219_s23 + $0x18] sm:$0xff]  ;;  %v265_v7 = vld [vmem:[%s219_s23 + $0x20] sm:$0xff]  ;;  %v266_v8 = vld [vmem:[%s219_s23 + $0x28] sm:$0xff]  ;;  %s2696_s20 = scalar_lea.hbm %s2746_s4, %s1859_s29  ;;  %p2756_p1 = scmp.ne.s32.totalorder %s2751_s27, 0 }
  0x55   : > { %2083 = vmatprep.subr.bf16.mxu0 %v2082_v3  ;;  %v267_v9 = vld [vmem:[%s219_s23 + $0x30] sm:$0xff]  ;;  %v268_v10 = vld [vmem:[%s219_s23 + $0x38] sm:$0xff]  ;;  %v2563_v11 = vld [vmem:[%s2542_s13] sm:$0xff]  ;;  %s1686_s23 = sshll.u32 %s257_s11, 4  ;;  %s2341_s6 = smov [#allocation7]   ;;  %s2690_s23 = int_to_ptr.vmem [resolvable:$true] %s1686_s23 }
  0x56   : > { %2085 = vmatpush3.bf16.msra.mxu0 %v2082_v3  ;;  %1962 = vmatprep.mubr.msk.f32.mxu1 %vm284_vm0, %v2563_v11  ;;  %v762_v12 = vld [vmem:[%s2744_s2 + $0x10] sm:$0xff]  ;;  %v763_v13 = vld [vmem:[%s2744_s2 + $0x18] sm:$0xff]  ;;  %v764_v14 = vld [vmem:[%s2744_s2 + $0x20] sm:$0xff]  ;;  %s2265_s22 = scalar_lea.vmem %s2690_s23, 1024  ;;  %s2269_s9 = sshll.u32 %s2341_s6, 4  ;;  %s2270_s9 = int_to_ptr.vmem [resolvable:$false] %s2269_s9 }
  0x57   : > { %v2102_v15 = vpack.c.bf16 %v763_v13, %v762_v12  ;;  %v765_v16 = vld [vmem:[%s2744_s2 + $0x28] sm:$0xff]  ;;  %v1797_v18 = vld [vmem:[%s2745_s3] ss:$0 sm:$0xff]  ;;  %v2586_v31 = vld [vmem:[%s2542_s13 + $0x10] sm:$0xff]  ;;  %p2266_p13 = scmp.ne.s32.totalorder %s2690_s23, %s2265_s22  ;;  %s2271_s26 = scalar_lea.vmem %s2270_s9, 2048 }
  0x58   : > { %v2106_v17 = vpack.c.bf16 %v765_v16, %v764_v14  ;;  %v2583_v28 = vld [vmem:[%s2542_s13 + $0x8] sm:$0xff]  ;;  %v2593_v35 = vld [vmem:[%s2542_s13 + $0x18] sm:$0xff]  ;;  %v2596_v38 = vld [vmem:[%s2542_s13 + $0x20] sm:$0xff]  ;;  %p2272_p5 = scmp.lt.s32.totalorder %s2690_s23, %s2270_s9  ;;  %p2273_p7 = scmp.lt.s32.totalorder %s2271_s26, %s2265_s22 }
  0x59   : > { %1947 = vmatmul.mubr.msk.f32.vlgmr.msra.gmra.mrb[0].mxu0 %vm284_vm0, %v262_v4  ;;  %2103 = vmatprep.subr.bf16.mxu0 %v2102_v15  ;;  %v2603_v42 = vld [vmem:[%s2542_s13 + $0x28] sm:$0xff]  ;;  %v2606_v44 = vld [vmem:[%s2542_s13 + $0x30] sm:$0xff]  ;;  %v2613_v45 = vld [vmem:[%s2542_s13 + $0x38] sm:$0xff]  ;;  %p2267_p12 = pnand %p2266_p13, %p2756_p1 }
  0x5a   : > { %1949 = vmatprep.mubr.msk.f32.mxu0 %vm284_vm0, %v263_v5  ;;  %2105 = vmatpush3.bf16.msra.mxu0 %v2102_v15  ;;  %v1814_v13 = vld [vmem:[%s2745_s3 + $0x1] ss:$0 sm:$0xff]  ;;  %p2274_p9 = por %p2273_p7, %p2272_p5 }
  0x5b   : > { %2107 = vmatprep.subr.bf16.mxu0 %v2106_v17  ;;  %p2268_p10 = pneg %p2267_p12 }
  0x5d   : > { %1950 = vmatmul.mubr.msk.f32.gmra.mrb[2].mxu0 %vm284_vm0, %v264_v6  ;;  %v1225_v6 = vld [vmem:[%s2744_s2 + $0x30] sm:$0xff]  ;;  %p2275_p11 = pnand %p2274_p9, %p2268_p10 }
  0x5e   : > { %1952 = vmatprep.mubr.msk.f32.mxu0 %vm284_vm0, %v265_v7  ;;  %2109 = vmatpush3.bf16.msra.mxu0 %v2106_v17  ;;  %v1226_v7 = vld [vmem:[%s2744_s2 + $0x38] sm:$0xff] }
  0x61   : > { %1953 = vmatmul.mubr.msk.f32.gmra.mrb[4].mxu0 %vm284_vm0, %v266_v8  ;;  %v1227_v8 = vld [vmem:[%s2744_s2 + $0x40] sm:$0xff] }
  0x62   : > { %1955 = vmatprep.mubr.msk.f32.mxu0 %vm284_vm0, %v267_v9  ;;  %v2126_v9 = vpack.c.bf16 %v1226_v7, %v1225_v6 }
  0x64   : > { %2127 = vmatprep.subr.bf16.mxu0 %v2126_v9 }
  0x65   : > { %1956 = vmatmul.mubr.msk.f32.gmra.mrb[6].mxu0 %vm284_vm0, %v268_v10  ;;  %v1228_v10 = vld [vmem:[%s2744_s2 + $0x48] sm:$0xff] }
  0x66   : > { %v2130_v12 = vpack.c.bf16 %v1228_v10, %v1227_v8 }
 0x12c   : > { %v1948_v19 = vpop.f32.mrb[0].mxu0 }
 0x12d   : > { %v381_v20 = vadd.f32 %v1948_v19, %v1797_v18  ;;  %v375_v21 = vpop.f32.mrb[1].mxu0 }
 0x12e   : > { %v376_v22 = vadd.f32 %v1797_v18, %v375_v21 }
 0x130   : > { %v1951_v23 = vpop.f32.mrb[2].mxu0  ;;  %v2086_v24 = vpack.c.bf16 %v381_v20, %v376_v22 }
 0x131   : > { %v391_v25 = vadd.f32 %v1951_v23, %v1797_v18  ;;  %v385_v26 = vpop.f32.mrb[3].mxu0 }
 0x132   : > { %v386_v27 = vadd.f32 %v1797_v18, %v385_v26  ;;  %2087 = vmatprep.subr.bf16.mxu1 %v2086_v24 }
 0x133   : > { %2089 = vmatpush3.bf16.msra.mxu1 %v2086_v24 }
 0x134   : > { %v2090_v29 = vpack.c.bf16 %v391_v25, %v386_v27  ;;  %v1954_v30 = vpop.f32.mrb[4].mxu0 }
 0x135   : > { %v401_v32 = vadd.f32 %v1954_v30, %v1797_v18  ;;  %v395_v33 = vpop.f32.mrb[5].mxu0 }
 0x136   : > { %v396_v34 = vadd.f32 %v1797_v18, %v395_v33  ;;  %1963 = vmatmul.mubr.msk.f32.vlgmr.msra.gmra.mrb[0].mxu1 %vm284_vm0, %v2583_v28  ;;  %2091 = vmatprep.subr.bf16.mxu1 %v2090_v29 }
 0x137   : > { %2093 = vmatpush3.bf16.msra.mxu1 %v2090_v29  ;;  %1969 = vmatprep.mubr.msk.f32.mxu1 %vm284_vm0, %v2586_v31 }
 0x138   : > { %v2094_v36 = vpack.c.bf16 %v401_v32, %v396_v34  ;;  %v1957_v37 = vpop.f32.mrb[6].mxu0 }
 0x139   : > { %v411_v39 = vadd.f32 %v1957_v37, %v1797_v18  ;;  %v405_v40 = vpop.f32.mrb[7].mxu0 }
 0x13a   : > { %v406_v41 = vadd.f32 %v1797_v18, %v405_v40  ;;  %1970 = vmatmul.mubr.msk.f32.vlgmr.msra.gmra.mrb[2].mxu1 %vm284_vm0, %v2593_v35  ;;  %2095 = vmatprep.subr.bf16.mxu1 %v2094_v36 }
 0x13b   : > { %2097 = vmatpush3.bf16.msra.mxu1 %v2094_v36  ;;  %1976 = vmatprep.mubr.msk.f32.mxu1 %vm284_vm0, %v2596_v38 }
 0x13c   : > { %v2098_v43 = vpack.c.bf16 %v411_v39, %v406_v41 }
 0x13e   : > { %1977 = vmatmul.mubr.msk.f32.vlgmr.msra.gmra.mrb[4].mxu1 %vm284_vm0, %v2603_v42  ;;  %2099 = vmatprep.subr.bf16.mxu1 %v2098_v43 }
 0x13f   : > { %2101 = vmatpush3.bf16.msra.mxu1 %v2098_v43  ;;  %1983 = vmatprep.mubr.msk.f32.mxu1 %vm284_vm0, %v2606_v44 }
 0x142   : > { %1984 = vmatmul.mubr.msk.f32.vlgmr.msra.gmra.mrb[6].mxu1 %vm284_vm0, %v2613_v45 }
 0x143   : > { %2010 = vmatprep.mubr.msk.f32.mxu1 %vm284_vm0, %v2563_v11 }
 0x209   : > { %v1964_v46 = vpop.f32.mrb[0].mxu1 }
 0x20a   : > { %v747_v47 = vmul.f32 0.01, %v1964_v46  ;;  %v486_v48 = vpop.f32.mrb[1].mxu1  ;;  %vm739_vm1 = vcmp.gt.f32.partialorder %v1964_v46, 0.0 }
 0x20b   : > { %vm738_vm2 = vcmp.gt.f32.partialorder %v486_v48, 0.0  ;;  %v746_v49 = vmul.f32 0.01, %v486_v48 }
 0x20c   : > { %v755_v52 = vsel %vm739_vm1, %v1964_v46, %v747_v47 }
 0x20d   : > { %v1971_v50 = vpop.f32.mrb[2].mxu1  ;;  %v754_v51 = vsel %vm738_vm2, %v486_v48, %v746_v49 }
 0x20e   : > { %v749_v53 = vmul.f32 0.01, %v1971_v50  ;;  %v567_v54 = vpop.f32.mrb[3].mxu1  ;;  %1994 = vmatprep.mubr.msk.f32.mxu0 %vm771_vm3, %v754_v51  ;;  %vm741_vm4 = vcmp.gt.f32.partialorder %v1971_v50, 0.0 }
 0x20f   : > { %vm740_vm5 = vcmp.gt.f32.partialorder %v567_v54, 0.0  ;;  %v748_v55 = vmul.f32 0.01, %v567_v54  ;;  %1995 = vmatmul.mubr.msk.f32.vlgmr.msra.gmra.mrb[8].mxu0 %vm771_vm3, %v755_v52 }
 0x210   : > { %v757_v60 = vsel %vm741_vm4, %v1971_v50, %v749_v53  ;;  %2129 = vmatpush3.bf16.msra.mxu0 %v2126_v9 }
 0x211   : > { %v1978_v56 = vpop.f32.mrb[4].mxu1  ;;  %v756_v57 = vsel %vm740_vm5, %v567_v54, %v748_v55  ;;  %2131 = vmatprep.subr.bf16.mxu0 %v2130_v12 }
 0x212   : > { %v751_v58 = vmul.f32 0.01, %v1978_v56  ;;  %v648_v59 = vpop.f32.mrb[5].mxu1  ;;  %1997 = vmatprep.mubr.msk.f32.mxu0 %vm771_vm3, %v756_v57  ;;  %vm743_vm6 = vcmp.gt.f32.partialorder %v1978_v56, 0.0 }
 0x213   : > { %vm742_vm7 = vcmp.gt.f32.partialorder %v648_v59, 0.0  ;;  %v750_v61 = vmul.f32 0.01, %v648_v59  ;;  %1998 = vmatmul.mubr.msk.f32.gmra.mrb[10].mxu0 %vm771_vm3, %v757_v60 }
 0x214   : > { %v759_v2 = vsel %vm743_vm6, %v1978_v56, %v751_v58  ;;  %2133 = vmatpush3.bf16.msra.mxu0 %v2130_v12 }
 0x215   : > { %v1985_v62 = vpop.f32.mrb[6].mxu1  ;;  %v758_v63 = vsel %vm742_vm7, %v648_v59, %v750_v61 }
 0x216   : > { %v753_v0 = vmul.f32 0.01, %v1985_v62  ;;  %v729_v1 = vpop.f32.mrb[7].mxu1  ;;  %2000 = vmatprep.mubr.msk.f32.mxu0 %vm771_vm3, %v758_v63  ;;  %vm745_vm8 = vcmp.gt.f32.partialorder %v1985_v62, 0.0 }
 0x217   : > { %vm744_vm9 = vcmp.gt.f32.partialorder %v729_v1, 0.0  ;;  %v752_v3 = vmul.f32 0.01, %v729_v1  ;;  %2001 = vmatmul.mubr.msk.f32.gmra.mrb[12].mxu0 %vm771_vm3, %v759_v2 }
 0x218   : > { %v761_v5 = vsel %vm745_vm8, %v1985_v62, %v753_v0  ;;  %v1831_v0 = vld [vmem:[%s2745_s3 + $0x2] ss:$0 sm:$0xff] }
 0x219   : > { %v760_v4 = vsel %vm744_vm9, %v729_v1, %v752_v3 }
 0x21a   : > { %2003 = vmatprep.mubr.msk.f32.mxu0 %vm771_vm3, %v760_v4 }
 0x21b   : > { %2004 = vmatmul.mubr.msk.f32.gmra.mrb[14].mxu0 %vm771_vm3, %v761_v5 }
 0x2e2   : > { %v1996_v14 = vpop.f32.mrb[8].mxu0 }
 0x2e3   : > { %v868_v15 = vadd.f32 %v1996_v14, %v1814_v13  ;;  %v862_v16 = vpop.f32.mrb[9].mxu0 }
 0x2e4   : > { %v863_v17 = vadd.f32 %v1814_v13, %v862_v16 }
 0x2e6   : > { %v2110_v18 = vpack.c.bf16 %v868_v15, %v863_v17  ;;  %v1999_v19 = vpop.f32.mrb[10].mxu0 }
 0x2e7   : > { %v878_v20 = vadd.f32 %v1999_v19, %v1814_v13  ;;  %v872_v21 = vpop.f32.mrb[11].mxu0 }
 0x2e8   : > { %v873_v22 = vadd.f32 %v1814_v13, %v872_v21  ;;  %2111 = vmatprep.subr.bf16.mxu1 %v2110_v18 }
 0x2e9   : > { %2113 = vmatpush3.bf16.msra.mxu1 %v2110_v18 }
 0x2ea   : > { %v2114_v23 = vpack.c.bf16 %v878_v20, %v873_v22  ;;  %v2002_v24 = vpop.f32.mrb[12].mxu0 }
 0x2eb   : > { %v888_v25 = vadd.f32 %v2002_v24, %v1814_v13  ;;  %v882_v26 = vpop.f32.mrb[13].mxu0 }
 0x2ec   : > { %v883_v27 = vadd.f32 %v1814_v13, %v882_v26  ;;  %2011 = vmatmul.mubr.msk.f32.vlgmr.msra.gmra.mrb[8].mxu1 %vm284_vm0, %v2583_v28  ;;  %2115 = vmatprep.subr.bf16.mxu1 %v2114_v23 }
 0x2ed   : > { %2117 = vmatpush3.bf16.msra.mxu1 %v2114_v23  ;;  %2017 = vmatprep.mubr.msk.f32.mxu1 %vm284_vm0, %v2586_v31 }
 0x2ee   : > { %v2118_v29 = vpack.c.bf16 %v888_v25, %v883_v27  ;;  %v2005_v30 = vpop.f32.mrb[14].mxu0 }
 0x2ef   : > { %v898_v32 = vadd.f32 %v2005_v30, %v1814_v13  ;;  %v892_v33 = vpop.f32.mrb[15].mxu0 }
 0x2f0   : > { %v893_v34 = vadd.f32 %v1814_v13, %v892_v33  ;;  %2018 = vmatmul.mubr.msk.f32.vlgmr.msra.gmra.mrb[10].mxu1 %vm284_vm0, %v2593_v35  ;;  %2119 = vmatprep.subr.bf16.mxu1 %v2118_v29 }
 0x2f1   : > { %2121 = vmatpush3.bf16.msra.mxu1 %v2118_v29  ;;  %2024 = vmatprep.mubr.msk.f32.mxu1 %vm284_vm0, %v2596_v38 }
 0x2f2   : > { %v2122_v36 = vpack.c.bf16 %v898_v32, %v893_v34 }
 0x2f4   : > { %2025 = vmatmul.mubr.msk.f32.vlgmr.msra.gmra.mrb[12].mxu1 %vm284_vm0, %v2603_v42  ;;  %2123 = vmatprep.subr.bf16.mxu1 %v2122_v36 }
 0x2f5   : > { %2125 = vmatpush3.bf16.msra.mxu1 %v2122_v36  ;;  %2031 = vmatprep.mubr.msk.f32.mxu1 %vm284_vm0, %v2606_v44 }
 0x2f8   : > { %2032 = vmatmul.mubr.msk.f32.vlgmr.msra.gmra.mrb[14].mxu1 %vm284_vm0, %v2613_v45 }
 0x2f9   : > { %2058 = vmatprep.mubr.msk.f32.mxu1 %vm284_vm0, %v2563_v11 }
 0x3bf   : > { %v2012_v37 = vpop.f32.mrb[8].mxu1 }
 0x3c0   : > { %v1210_v39 = vmul.f32 0.01, %v2012_v37  ;;  %v967_v40 = vpop.f32.mrb[9].mxu1  ;;  %vm1202_vm10 = vcmp.gt.f32.partialorder %v2012_v37, 0.0 }
 0x3c1   : > { %vm1201_vm11 = vcmp.gt.f32.partialorder %v967_v40, 0.0  ;;  %v1209_v41 = vmul.f32 0.01, %v967_v40 }
 0x3c2   : > { %v1218_v47 = vsel %vm1202_vm10, %v2012_v37, %v1210_v39 }
 0x3c3   : > { %v2019_v43 = vpop.f32.mrb[10].mxu1  ;;  %v1217_v46 = vsel %vm1201_vm11, %v967_v40, %v1209_v41 }
 0x3c4   : > { %v1212_v48 = vmul.f32 0.01, %v2019_v43  ;;  %v1042_v49 = vpop.f32.mrb[11].mxu1  ;;  %2042 = vmatprep.mubr.msk.f32.mxu0 %vm771_vm3, %v1217_v46  ;;  %vm1204_vm12 = vcmp.gt.f32.partialorder %v2019_v43, 0.0 }
 0x3c5   : > { %vm1203_vm13 = vcmp.gt.f32.partialorder %v1042_v49, 0.0  ;;  %v1211_v50 = vmul.f32 0.01, %v1042_v49  ;;  %2043 = vmatmul.mubr.msk.f32.vlgmr.msra.gmra.mrb[16].mxu0 %vm771_vm3, %v1218_v47 }
 0x3c6   : > { %v1220_v54 = vsel %vm1204_vm12, %v2019_v43, %v1212_v48 }
 0x3c7   : > { %v2026_v51 = vpop.f32.mrb[12].mxu1  ;;  %v1219_v11 = vsel %vm1203_vm13, %v1042_v49, %v1211_v50 }
 0x3c8   : > { %v1214_v52 = vmul.f32 0.01, %v2026_v51  ;;  %v1117_v53 = vpop.f32.mrb[13].mxu1  ;;  %2045 = vmatprep.mubr.msk.f32.mxu0 %vm771_vm3, %v1219_v11  ;;  %vm1206_vm14 = vcmp.gt.f32.partialorder %v2026_v51, 0.0 }
 0x3c9   : > { %vm1205_vm15 = vcmp.gt.f32.partialorder %v1117_v53, 0.0  ;;  %v1213_v55 = vmul.f32 0.01, %v1117_v53  ;;  %2046 = vmatmul.mubr.msk.f32.gmra.mrb[18].mxu0 %vm771_vm3, %v1220_v54 }
 0x3ca   : > { %v1222_v60 = vsel %vm1206_vm14, %v2026_v51, %v1214_v52 }
 0x3cb   : > { %v2033_v56 = vpop.f32.mrb[14].mxu1  ;;  %v1221_v57 = vsel %vm1205_vm15, %v1117_v53, %v1213_v55 }
 0x3cc   : > { %v1216_v58 = vmul.f32 0.01, %v2033_v56  ;;  %v1192_v59 = vpop.f32.mrb[15].mxu1  ;;  %2048 = vmatprep.mubr.msk.f32.mxu0 %vm771_vm3, %v1221_v57  ;;  %vm1208_vm1 = vcmp.gt.f32.partialorder %v2033_v56, 0.0 }
 0x3cd   : > { %vm1207_vm2 = vcmp.gt.f32.partialorder %v1192_v59, 0.0  ;;  %v1215_v61 = vmul.f32 0.01, %v1192_v59  ;;  %2049 = vmatmul.mubr.msk.f32.gmra.mrb[20].mxu0 %vm771_vm3, %v1222_v60 }
 0x3ce   : > { %v1224_v63 = vsel %vm1208_vm1, %v2033_v56, %v1216_v58 }
 0x3cf   : > { %v1223_v62 = vsel %vm1207_vm2, %v1192_v59, %v1215_v61 }
 0x3d0   : > { %2051 = vmatprep.mubr.msk.f32.mxu0 %vm771_vm3, %v1223_v62 }
 0x3d1   : > { %2052 = vmatmul.mubr.msk.f32.gmra.mrb[22].mxu0 %vm771_vm3, %v1224_v63 }
 0x498   : > { %v2044_v1 = vpop.f32.mrb[16].mxu0 }
 0x499   : > { %v1330_v2 = vadd.f32 %v2044_v1, %v1831_v0  ;;  %v1324_v3 = vpop.f32.mrb[17].mxu0 }
 0x49a   : > { %v1325_v4 = vadd.f32 %v1831_v0, %v1324_v3 }
 0x49c   : > { %v2134_v5 = vpack.c.bf16 %v1330_v2, %v1325_v4  ;;  %v2047_v6 = vpop.f32.mrb[18].mxu0 }
 0x49d   : > { %v1340_v7 = vadd.f32 %v2047_v6, %v1831_v0  ;;  %v1334_v8 = vpop.f32.mrb[19].mxu0 }
 0x49e   : > { %v1335_v9 = vadd.f32 %v1831_v0, %v1334_v8  ;;  %2135 = vmatprep.subr.bf16.mxu1 %v2134_v5 }
 0x49f   : > { %2137 = vmatpush3.bf16.msra.mxu1 %v2134_v5 }
 0x4a0   : > { %v2138_v10 = vpack.c.bf16 %v1340_v7, %v1335_v9  ;;  %v2050_v12 = vpop.f32.mrb[20].mxu0 }
 0x4a1   : > { %v1350_v13 = vadd.f32 %v2050_v12, %v1831_v0  ;;  %v1344_v14 = vpop.f32.mrb[21].mxu0 }
 0x4a2   : > { %v1345_v15 = vadd.f32 %v1831_v0, %v1344_v14  ;;  %2059 = vmatmul.mubr.msk.f32.vlgmr.msra.gmra.mrb[16].mxu1 %vm284_vm0, %v2583_v28  ;;  %2139 = vmatprep.subr.bf16.mxu1 %v2138_v10 }
 0x4a3   : > { %2141 = vmatpush3.bf16.msra.mxu1 %v2138_v10  ;;  %2065 = vmatprep.mubr.msk.f32.mxu1 %vm284_vm0, %v2586_v31 }
 0x4a4   : > { %v2142_v16 = vpack.c.bf16 %v1350_v13, %v1345_v15  ;;  %v2053_v17 = vpop.f32.mrb[22].mxu0 }
 0x4a5   : > { %v1360_v18 = vadd.f32 %v2053_v17, %v1831_v0  ;;  %v1354_v19 = vpop.f32.mrb[23].mxu0 }
 0x4a6   : > { %v1355_v20 = vadd.f32 %v1831_v0, %v1354_v19  ;;  %2066 = vmatmul.mubr.msk.f32.vlgmr.msra.gmra.mrb[18].mxu1 %vm284_vm0, %v2593_v35  ;;  %2143 = vmatprep.subr.bf16.mxu1 %v2142_v16 }
 0x4a7   : > { %2145 = vmatpush3.bf16.msra.mxu1 %v2142_v16  ;;  %2072 = vmatprep.mubr.msk.f32.mxu1 %vm284_vm0, %v2596_v38 }
 0x4a8   : > { %v2146_v28 = vpack.c.bf16 %v1360_v18, %v1355_v20 }
 0x4aa   : > { %2073 = vmatmul.mubr.msk.f32.vlgmr.msra.gmra.mrb[20].mxu1 %vm284_vm0, %v2603_v42  ;;  %2147 = vmatprep.subr.bf16.mxu1 %v2146_v28 }
 0x4ab   : > { %2149 = vmatpush3.bf16.msra.mxu1 %v2146_v28  ;;  %2079 = vmatprep.mubr.msk.f32.mxu1 %vm284_vm0, %v2606_v44 }
 0x4ae   : > { %2080 = vmatmul.mubr.msk.f32.vlgmr.msra.gmra.mrb[22].mxu1 %vm284_vm0, %v2613_v45 }
 0x575   : > { %v2060_v31 = vpop.f32.mrb[16].mxu1 }
 0x576   : > { %1664 = vst.msk [vmem:[%s257_s11 + $0x8] sm:$0xff] %vm771_vm3, %v2060_v31  ;;  %v1429_v35 = vpop.f32.mrb[17].mxu1 }
 0x577   : > { %1663 = vst.msk [vmem:[%s257_s11] sm:$0xff] %vm771_vm3, %v1429_v35 }
 0x579   : > { %v2067_v38 = vpop.f32.mrb[18].mxu1 }
 0x57a   : > { %1666 = vst.msk [vmem:[%s257_s11 + $0x18] sm:$0xff] %vm771_vm3, %v2067_v38  ;;  %v1504_v42 = vpop.f32.mrb[19].mxu1 }
 0x57b   : > { %1665 = vst.msk [vmem:[%s257_s11 + $0x10] sm:$0xff] %vm771_vm3, %v1504_v42 }
 0x57d   : > { %v2074_v44 = vpop.f32.mrb[20].mxu1 }
 0x57e   : > { %1668 = vst.msk [vmem:[%s257_s11 + $0x28] sm:$0xff] %vm771_vm3, %v2074_v44  ;;  %v1579_v45 = vpop.f32.mrb[21].mxu1 }
 0x57f   : > { %1667 = vst.msk [vmem:[%s257_s11 + $0x20] sm:$0xff] %vm771_vm3, %v1579_v45 }
 0x581   : > { %v2081_v21 = vpop.f32.mrb[22].mxu1 }
 0x582   : > { %1670 = vst.msk [vmem:[%s257_s11 + $0x38] sm:$0xff] %vm771_vm3, %v2081_v21  ;;  %v1654_v22 = vpop.f32.mrb[23].mxu1 }
 0x583   : > { %1669 = vst.msk [vmem:[%s257_s11 + $0x30] sm:$0xff] %vm771_vm3, %v1654_v22 }
 0x584   : > { %2278 = shalt.err (!%p2275_p11)
}
 0x585   : > { %s2279_s8 = scalar_lea.hbm %s2696_s20, 1024  ;;  %s2283_s7 = scalar_lea.hbm %s2746_s4, 2048 }
 0x586   : > { %p2280_p3 = scmp.ne.s32.totalorder %s2696_s20, %s2279_s8  ;;  %p2284_p2 = scmp.lt.u32.totalorder %s2696_s20, %s2746_s4 }
 0x587   : > { %p2285_p4 = scmp.lt.u32.totalorder %s2283_s7, %s2279_s8  ;;  %p2287_p13 = scmp.lt.u32.totalorder %s2279_s8, %s2696_s20 }
 0x588   : > { %p2281_p8 = pnand %p2280_p3, %p2756_p1 }
 0x589   : > { %p2286_p6 = por %p2285_p4, %p2284_p2 }
 0x58a   : > { %p2282_p0 = pneg %p2281_p8 }
 0x58b   : > { %p2288_p12 = por %p2287_p13, %p2286_p6 }
 0x58d   : > { %p2289_p10 = pnand %p2288_p12, %p2282_p0 }
 0x58f   : > { %2292 = shalt.err (!%p2289_p10)
}
 0x590   : > { %s2342_s11 = smov 128   ;;  %s2343_s29 = smov 8  }
 0x591   : > { %2154 = dma.vmem_to_hbm [thread:$0]  (%p2756_p1), %s2690_s23, 1024, %s2696_s20, %s1672_s19, %s2342_s11, %s2342_s11, %s2343_s29  }
 0x592 PF: > { %s1701_s30 = sand.u32 1, %s2323_s15   ;;  %p2757_p5 = scmp.ne.s32.totalorder %s2752_s28, 0 }
 0x593   : > { %p2758_p7 = scmp.ge.s32.totalorder %s2335_s18, 2  ;;  %s1702_s13 = scalar_lea.sflag [#allocation4], %s1701_s30 }
 0x595   : > { %p2164_p9 = pnand %p2758_p7, %p2757_p5 }
 0x597   : > { %2318 = dma.done.wait (!%p2164_p9), %s1702_s13, 1024  }
 0x598   : > { %2320 = vsyncadd (!%p2164_p9), %s1702_s13, 4294966272  ;;  %p20_p11 = scmp.ge.s32.totalorder %s2394_s21, 4   ;;  %s2759_s15 = smov %s2327_s16 }
 0x599   : > { %s2760_s16 = smov %s2331_s17  ;;  %s2761_s17 = smov %s2406_s24 }
 0x59a   : > { %s2762_s18 = smov %s2394_s21  ;;  %22 = sbr.rel (!%p20_p11) target bundleno = 7 (0x7), region = 94 }
 0x5a1   :  { %1707 = vsyncpa [#allocation3], 1 }
 0x5a2   :  { %1709 = vsyncpa [#allocation3 + $0x1], 1 }
 0x5a3   :  { %1710 = vsyncpa [#allocation6], 1 }
 0x5a4   :  { %1712 = vsyncpa [#allocation6 + $0x1], 1 }
 0x5a5   :  { %1713 = vsyncpa [#allocation4], 1 }
 0x5a6   :  { %1715 = vsyncpa [#allocation4 + $0x1], 1 }

</bundles_post_ra>
